<compile_context>
chip_gen: v7x
topology: tpu7x:2x2x1
jax: 0.10.0
libtpu: 0.0.40
codegen_flags: <defaults>
</compile_context>

<pallas_src>
import functools

import jax
import jax.numpy as jnp
from jax import lax
from jax.experimental import pallas as pl
from jax.experimental.pallas import tpu as pltpu


def _round_up(x, m):
    return ((x + m - 1) // m) * m


# ------------------------------------------------------------------ kernel

def _trace_mlp_kernel(x_ref, w1_ref, w2_ref, o_ref):
    """x_ref: (L, tm, trace_dim)  w1_ref: (L, trace_dim, Hp)  w2_ref: (Hp, Mp)."""
    L = x_ref.shape[0]
    # permute(1,0,2).reshape(N, L*trace_dim) @ W1  ==  sum_l x[l] @ W1[l]
    h = jnp.dot(x_ref[0], w1_ref[0], preferred_element_type=jnp.float32)
    for l in range(1, L):                       # L is small and static
        h = h + jnp.dot(x_ref[l], w1_ref[l], preferred_element_type=jnp.float32)
    h = jnp.maximum(h, 0.0)                                   # ReLU, f32
    # TODO(synk): training-mode F.dropout not implemented; eval mode -> identity.
    y = jnp.dot(h.astype(w2_ref.dtype), w2_ref[...],
                preferred_element_type=jnp.float32)
    ssq = jnp.sum(y * y, axis=1, keepdims=True)
    inv = lax.rsqrt(jnp.maximum(ssq, 1e-24))                  # == 1 / max(||y||_2, 1e-12)
    o_ref[...] = (y * inv).astype(o_ref.dtype)


# ------------------------------------------------------------------ wrapper

def trace_mlp_forward(trace_all, w1, w2, *, tm=256, use_bf16=True,
                      out_dtype=jnp.float32):
    """trace_all: (L, N, trace_dim); w1: (L*trace_dim, hidden); w2: (hidden, mvc).

    Weights are stored pre-transposed ([fan_in, fan_out]) relative to nn.Linear.
    """
    L, n, trace_dim = trace_all.shape
    in_dim = L * trace_dim
    hidden = w1.shape[1]
    mvc_dim = w2.shape[1]
    assert w1.shape[0] == in_dim and w2.shape[0] == hidden

    compute_dtype = jnp.bfloat16 if use_bf16 else jnp.float32

    # Lane-dense padding of hidden / output feature dims. Zero W1 columns make
    # the padded h columns 0 (ReLU(0)=0), zero W2 rows/cols contribute nothing
    # to y or to its L2 norm, so real columns are unchanged.
    hidden_pad = _round_up(hidden, 128)
    mvc_pad = _round_up(mvc_dim, 128)

    w1p = jnp.pad(w1, ((0, 0), (0, hidden_pad - hidden)))
    w1p = w1p.reshape(L, trace_dim, hidden_pad).astype(compute_dtype)
    w2p = jnp.pad(w2, ((0, hidden_pad - hidden), (0, mvc_pad - mvc_dim)))
    w2p = w2p.astype(compute_dtype)

    # x stays in its native (L, N, trace_dim) layout (no transpose/reshape and
    # no row pad in HBM) and is DMA'd in bf16 — the MXU consumes bf16 anyway.
    x = trace_all.astype(compute_dtype)

    # Row tile: clamp so the block never exceeds the row dim; keep a multiple
    # of 8 otherwise (full-dim blocks are exempt from the (8,128) rule).
    if tm >= n:
        tm = n
    else:
        tm = max(8, (tm // 8) * 8)
    grid_m = pl.cdiv(n, tm)

    cost = pl.CostEstimate(
        flops=2 * n * (in_dim * hidden + hidden * mvc_dim),   # real (unpadded) FLOPs
        transcendentals=n,                                    # one rsqrt per row
        bytes_accessed=(x.size * x.dtype.itemsize
                        + w1p.size * w1p.dtype.itemsize
                        + w2p.size * w2p.dtype.itemsize
                        + n * mvc_pad * jnp.dtype(out_dtype).itemsize),
    )

    out = pl.pallas_call(
        _trace_mlp_kernel,
        grid=(grid_m,),
        in_specs=[
            pl.BlockSpec((L, tm, trace_dim), lambda i: (0, i, 0)),          # x row tile
            pl.BlockSpec((L, trace_dim, hidden_pad), lambda i: (0, 0, 0)),  # W1, resident
            pl.BlockSpec((hidden_pad, mvc_pad), lambda i: (0, 0)),          # W2, resident
        ],
        out_specs=pl.BlockSpec((tm, mvc_pad), lambda i: (i, 0)),
        out_shape=jax.ShapeDtypeStruct((n, mvc_pad), out_dtype),
        compiler_params=pltpu.CompilerParams(
            dimension_semantics=("parallel",),
            vmem_limit_bytes=32 * 1024 * 1024,   # headroom even on v7x's 64 MiB VMEM
        ),
        cost_estimate=cost,
    )(x, w1p, w2p)

    return out[:, :mvc_dim]


# ------------------------------------------------------------------ reference

def _trace_mlp_ref(trace_all, w1, w2):
    L, n, d = trace_all.shape
    x = jnp.transpose(trace_all, (1, 0, 2)).reshape(n, L * d)
    h = jnp.maximum(x @ w1, 0.0)
    y = h @ w2
    nrm = jnp.sqrt(jnp.sum(y * y, axis=1, keepdims=True))
    return y / jnp.maximum(nrm, 1e-12)


# ------------------------------------------------------------------ main

if __name__ == "__main__":
    # Small shapes consistent with TraceMLP.__init__(trace_dim, L, hidden_dim, mvc_dim).
    trace_dim, L, hidden_dim, mvc_dim = 32, 2, 32, 16
    n_nodes = 200                                    # non-multiple of the row tile

    key = jax.random.PRNGKey(0)
    k_trace, k_w1, k_w2 = jax.random.split(key, 3)

    trace_all = jax.random.normal(k_trace, (L, n_nodes, trace_dim), jnp.float32)
    w1 = jax.random.normal(k_w1, (trace_dim * L, hidden_dim), jnp.float32) \
        / jnp.sqrt(float(trace_dim * L))
    w2 = jax.random.normal(k_w2, (hidden_dim, mvc_dim), jnp.float32) \
        / jnp.sqrt(float(hidden_dim))

    ref = _trace_mlp_ref(trace_all, w1, w2)

    # Default path: tm=256 clamps to n -> single grid step, everything resident.
    fwd = jax.jit(functools.partial(trace_mlp_forward, tm=256, use_bf16=True))
    mvc = fwd(trace_all, w1, w2)
    jax.block_until_ready(mvc)
    assert mvc.shape == (n_nodes, mvc_dim)
    err = float(jnp.max(jnp.abs(mvc - ref)))
    assert err < 5e-2, f"max abs err vs f32 reference: {err}"

    # Also exercise the multi-block, ragged-last-block path (grid=2 at tm=128).
    fwd_ragged = jax.jit(functools.partial(trace_mlp_forward, tm=128, use_bf16=True))
    mvc2 = fwd_ragged(trace_all, w1, w2)
    jax.block_until_ready(mvc2)
    err2 = float(jnp.max(jnp.abs(mvc2 - ref)))
    assert err2 < 5e-2, f"ragged-tile path max abs err: {err2}"

    print("KERNEL_OK")
</pallas_src>

<mosaic_0001>
module attributes {stable_mosaic.version = 11 : i64} {
  func.func @_trace_mlp_kernel(%arg0: i32, %arg1: memref<2x200x32xbf16, #tpu.memory_space<vmem>>, %arg2: memref<2x32x128xbf16, #tpu.memory_space<vmem>>, %arg3: memref<128x128xbf16, #tpu.memory_space<vmem>>, %arg4: memref<200x128xf32, #tpu.memory_space<vmem>>) attributes {dimension_semantics = [#tpu.dimension_semantics<parallel>], iteration_bounds = array<i64: 1>, scalar_prefetch = 0 : i64, scratch_operands = 0 : i64, tpu.core_type = #tpu.core_type<tc>, window_params = [{transform_indices = @transform_0, window_bounds = array<i64: 2, 200, 32>}, {pipeline_mode = #tpu.pipeline_mode<synchronous>, transform_indices = @transform_1, window_bounds = array<i64: 2, 32, 128>}, {pipeline_mode = #tpu.pipeline_mode<synchronous>, transform_indices = @transform_2, window_bounds = array<i64: 128, 128>}, {transform_indices = @transform_3, window_bounds = array<i64: 200, 128>}]} {
    %c0 = arith.constant 0 : index
    %c0_0 = arith.constant 0 : index
    %c0_1 = arith.constant 0 : index
    %0 = vector.load %arg1[%c0, %c0_0, %c0_1] : memref<2x200x32xbf16, #tpu.memory_space<vmem>>, vector<1x200x32xbf16>
    %1 = vector.shape_cast %0 : vector<1x200x32xbf16> to vector<200x32xbf16>
    %c0_2 = arith.constant 0 : index
    %c0_3 = arith.constant 0 : index
    %c0_4 = arith.constant 0 : index
    %2 = vector.load %arg2[%c0_2, %c0_3, %c0_4] : memref<2x32x128xbf16, #tpu.memory_space<vmem>>, vector<1x32x128xbf16>
    %3 = vector.shape_cast %2 : vector<1x32x128xbf16> to vector<32x128xbf16>
    %cst = arith.constant dense<0.000000e+00> : vector<200x128xf32>
    %4 = tpu.matmul %1, %3, %cst {dimension_numbers = #tpu.dot_dimension_numbers<[1], [0], [0], [1], [0, 0, 1, 1], [], []>} : vector<200x32xbf16>, vector<32x128xbf16>, vector<200x128xf32> -> vector<200x128xf32>
    %c1 = arith.constant 1 : index
    %c0_5 = arith.constant 0 : index
    %c0_6 = arith.constant 0 : index
    %5 = vector.load %arg1[%c1, %c0_5, %c0_6] : memref<2x200x32xbf16, #tpu.memory_space<vmem>>, vector<1x200x32xbf16>
    %6 = vector.shape_cast %5 : vector<1x200x32xbf16> to vector<200x32xbf16>
    %c1_7 = arith.constant 1 : index
    %c0_8 = arith.constant 0 : index
    %c0_9 = arith.constant 0 : index
    %7 = vector.load %arg2[%c1_7, %c0_8, %c0_9] : memref<2x32x128xbf16, #tpu.memory_space<vmem>>, vector<1x32x128xbf16>
    %8 = vector.shape_cast %7 : vector<1x32x128xbf16> to vector<32x128xbf16>
    %cst_10 = arith.constant dense<0.000000e+00> : vector<200x128xf32>
    %9 = tpu.matmul %6, %8, %cst_10 {dimension_numbers = #tpu.dot_dimension_numbers<[1], [0], [0], [1], [0, 0, 1, 1], [], []>} : vector<200x32xbf16>, vector<32x128xbf16>, vector<200x128xf32> -> vector<200x128xf32>
    %10 = arith.addf %4, %9 : vector<200x128xf32>
    %cst_11 = arith.constant 0.000000e+00 : f32
    %11 = vector.broadcast %cst_11 : f32 to vector<200x128xf32>
    %12 = arith.maximumf %10, %11 : vector<200x128xf32>
    %13 = arith.truncf %12 : vector<200x128xf32> to vector<200x128xbf16>
    %c0_12 = arith.constant 0 : index
    %c0_13 = arith.constant 0 : index
    %14 = vector.load %arg3[%c0_12, %c0_13] : memref<128x128xbf16, #tpu.memory_space<vmem>>, vector<128x128xbf16>
    %cst_14 = arith.constant dense<0.000000e+00> : vector<200x128xf32>
    %15 = tpu.matmul %13, %14, %cst_14 {dimension_numbers = #tpu.dot_dimension_numbers<[1], [0], [0], [1], [0, 0, 1, 1], [], []>} : vector<200x128xbf16>, vector<128x128xbf16>, vector<200x128xf32> -> vector<200x128xf32>
    %16 = arith.mulf %15, %15 : vector<200x128xf32>
    %cst_15 = arith.constant dense<0.000000e+00> : vector<200xf32>
    %17 = vector.multi_reduction <add>, %16, %cst_15 [1] : vector<200x128xf32> to vector<200xf32>
    %18 = vector.shape_cast %17 : vector<200xf32> to vector<200x1xf32>
    %cst_16 = arith.constant 1.000000e-24 : f32
    %19 = vector.broadcast %cst_16 : f32 to vector<200x1xf32>
    %20 = arith.maximumf %18, %19 : vector<200x1xf32>
    %21 = math.rsqrt %20 : vector<200x1xf32>
    %22 = vector.broadcast %21 : vector<200x1xf32> to vector<200x128xf32>
    %23 = arith.mulf %15, %22 : vector<200x128xf32>
    %c0_17 = arith.constant 0 : index
    %c0_18 = arith.constant 0 : index
    %24 = vector.load %arg4[%c0_17, %c0_18] : memref<200x128xf32, #tpu.memory_space<vmem>>, vector<200x128xf32>
    tpu.vector_store %arg4[%c0_17, %c0_18], %23 {strides = array<i32>} : memref<200x128xf32, #tpu.memory_space<vmem>>, vector<200x128xf32>,
    return
  }
  func.func @transform_0(%arg0: i32) -> (i32, i32, i32) {
    %c0_i32 = arith.constant 0 : i32
    %c0_i32_0 = arith.constant 0 : i32
    %c0_i32_1 = arith.constant 0 : i32
    return %c0_i32, %arg0, %c0_i32_0 : i32, i32, i32
  }
  func.func @transform_1(%arg0: i32) -> (i32, i32, i32) {
    %c0_i32 = arith.constant 0 : i32
    %c0_i32_0 = arith.constant 0 : i32
    %c0_i32_1 = arith.constant 0 : i32
    %c0_i32_2 = arith.constant 0 : i32
    return %c0_i32, %c0_i32_0, %c0_i32_1 : i32, i32, i32
  }
  func.func @transform_2(%arg0: i32) -> (i32, i32) {
    %c0_i32 = arith.constant 0 : i32
    %c0_i32_0 = arith.constant 0 : i32
    %c0_i32_1 = arith.constant 0 : i32
    return %c0_i32, %c0_i32_0 : i32, i32
  }
  func.func @transform_3(%arg0: i32) -> (i32, i32) {
    %c0_i32 = arith.constant 0 : i32
    %c0_i32_0 = arith.constant 0 : i32
    return %arg0, %c0_i32 : i32, i32
  }
}

</mosaic_0001>

<bundles_post_ra>
// kernel: trace_mlp_forward.1
= control target key start
LH: loop header
LB: loop body
LE: loop exit
PB: predicated region body
PF: predicated region fallthrough
CT: control target
= control target key end

     0   :  { %v1450_v0 = vmov 0.0   ;;  %vm1451_vm0 = vmmov 0   ;;  %vm150_vm1 = vcmask 261120   ;;  %s1937_s1 = inlined_call_operand.vmem [shape: bf16[2,32,128], index: 1, kind: input, shape index: {}]   ;;  %s1938_s0 = inlined_call_operand.vmem [shape: bf16[2,200,32], index: 0, kind: input, shape index: {}]   ;;  %s1939_s2 = inlined_call_operand.vmem [shape: bf16[128,128], index: 2, kind: input, shape index: {}]   ;;  %s1940_s3 = inlined_call_operand.vmem [shape: f32[200,128], index: 3, kind: output, shape index: {}]  }
   0x1   :  { %1137 = vmatprep.subr.bf16.mxu0 %v1450_v0  ;;  %v1362_v1 = vld [vmem:[%s1937_s1 + $0x10] sm:$0xff]   ;;  %1141 = vmatprep.mubr.msk.bf16.mxu0 %vm1451_vm0, %v1450_v0  ;;  %v1363_v2 = vld [vmem:[%s1937_s1 + $0x18] sm:$0xff]   ;;  %v1364_v3 = vld [vmem:[%s1938_s0 + $0x64] sm:$0xff]  }
   0x2   :  { %1317 = vmatprep.subr.bf16.mxu1 %v1450_v0  ;;  %1169 = vmatprep.mubr.msk.bf16.mxu1 %vm1451_vm0, %v1450_v0  ;;  %v1365_v4 = vld [vmem:[%s1937_s1] sm:$0xff]   ;;  %v1369_v5 = vld [vmem:[%s1937_s1 + $0x8] sm:$0xff]   ;;  %v1367_v8 = vld [vmem:[%s1938_s0 + $0x74] sm:$0xff]  }
   0x3   :  { %1138 = vmatpush3.bf16.msra.mxu0 %v1362_v1  ;;  %1319 = vmatpush3.bf16.msra.mxu1 %v1362_v1  ;;  %v1366_v6 = vld [vmem:[%s1938_s0 + $0x6c] sm:$0xff]   ;;  %v1380_v7 = vld [vmem:[%s1938_s0 + $0x9c] sm:$0xff]   ;;  %v1382_v9 = vld [vmem:[%s1938_s0 + $0xa4] sm:$0xff]  }
   0x4   :  { %1139 = vmatprep.subr.bf16.mxu0 %v1450_v0  ;;  %1318 = vmatprep.subr.bf16.mxu1 %v1450_v0  ;;  %v1368_v10 = vld [vmem:[%s1938_s0 + $0x7c] sm:$0xff]   ;;  %v1384_v11 = vld [vmem:[%s1938_s0 + $0xac] sm:$0xff]   ;;  %v1370_v13 = vld [vmem:[%s1938_s0 + $0x84] sm:$0xff]  }
   0x5   :  { %v1392_v12 = vld [vmem:[%s1939_s2] sm:$0xff]   ;;  %v1393_v14 = vld [vmem:[%s1939_s2 + $0x8] sm:$0xff]   ;;  %v1386_v15 = vld [vmem:[%s1938_s0 + $0xb4] sm:$0xff]  }
   0x6   :  { %v1394_v16 = vld [vmem:[%s1939_s2 + $0x10] sm:$0xff]   ;;  %v1395_v18 = vld [vmem:[%s1939_s2 + $0x18] sm:$0xff]   ;;  %v1396_v20 = vld [vmem:[%s1939_s2 + $0x20] sm:$0xff]  }
   0x7   :  { %1140 = vmatpush3.bf16.msra.mxu0 %v1363_v2  ;;  %1320 = vmatpush3.bf16.msra.mxu1 %v1363_v2  ;;  %v1371_v17 = vld [vmem:[%s1938_s0 + $0x8c] sm:$0xff]   ;;  %v1388_v19 = vld [vmem:[%s1938_s0 + $0xbc] sm:$0xff]   ;;  %v1372_v21 = vld [vmem:[%s1938_s0 + $0x94] sm:$0xff]  }
   0x8   :  { %1193 = vmatprep.subr.bf16.mxu0 %v1450_v0  ;;  %1249 = vmatprep.subr.bf16.mxu1 %v1450_v0  ;;  %v1397_v22 = vld [vmem:[%s1939_s2 + $0x28] sm:$0xff]   ;;  %v1390_v23 = vld [vmem:[%s1938_s0 + $0xc4] ss:$0 sps:$4 sm:$0xff]   ;;  %v1398_v24 = vld [vmem:[%s1939_s2 + $0x30] sm:$0xff]  }
   0x9   :  { %v1373_v25 = vld [vmem:[%s1938_s0] sm:$0xff]   ;;  %v1374_v26 = vld [vmem:[%s1938_s0 + $0x8] sm:$0xff]   ;;  %v1375_v27 = vld [vmem:[%s1938_s0 + $0x10] sm:$0xff]  }
   0xa   :  { %1142 = vmatmul.mubr.msk.bf16.vlgmr.msra.gmra.mrb[0].mxu0 %vm150_vm1, %v1364_v3  ;;  %1170 = vmatmul.mubr.msk.bf16.vlgmr.msra.gmra.mrb[0].mxu1 %vm150_vm1, %v1380_v7  ;;  %v1376_v28 = vld [vmem:[%s1938_s0 + $0x18] sm:$0xff]   ;;  %v1377_v29 = vld [vmem:[%s1938_s0 + $0x20] sm:$0xff]   ;;  %v1378_v30 = vld [vmem:[%s1938_s0 + $0x28] sm:$0xff]  }
   0xb   :  { %1194 = vmatpush3.bf16.msra.mxu0 %v1365_v4  ;;  %1145 = vmatprep.mubr.msk.bf16.mxu0 %vm1451_vm0, %v1450_v0  ;;  %v1379_v31 = vld [vmem:[%s1938_s0 + $0x30] sm:$0xff]   ;;  %v1381_v32 = vld [vmem:[%s1938_s0 + $0x38] sm:$0xff]   ;;  %v1383_v33 = vld [vmem:[%s1938_s0 + $0x40] sm:$0xff]  }
   0xc   :  { %1195 = vmatprep.subr.bf16.mxu0 %v1450_v0  ;;  %1173 = vmatprep.mubr.msk.bf16.mxu1 %vm1451_vm0, %v1450_v0  ;;  %v1385_v34 = vld [vmem:[%s1938_s0 + $0x48] sm:$0xff]   ;;  %v1387_v35 = vld [vmem:[%s1938_s0 + $0x50] sm:$0xff]   ;;  %v1389_v36 = vld [vmem:[%s1938_s0 + $0x58] sm:$0xff]  }
   0xd   :  { %1250 = vmatpush3.bf16.msra.mxu1 %v1392_v12  ;;  %v1399_v37 = vld [vmem:[%s1939_s2 + $0x38] sm:$0xff]   ;;  %v1391_v38 = vld [vmem:[%s1938_s0 + $0x60] ss:$0 sps:$4 sm:$0xff]  }
   0xe   :  { %1251 = vmatprep.subr.bf16.mxu1 %v1450_v0 }
   0xf   :  { %1196 = vmatpush3.bf16.msra.mxu0 %v1369_v5 }
  0x11   :  { %1252 = vmatpush3.bf16.msra.mxu1 %v1393_v14 }
  0x12   :  { %1146 = vmatmul.mubr.msk.bf16.gmra.mrb[4].mxu0 %vm150_vm1, %v1366_v6  ;;  %1174 = vmatmul.mubr.msk.bf16.gmra.mrb[4].mxu1 %vm150_vm1, %v1382_v9 }
  0x13   :  { %1149 = vmatprep.mubr.msk.bf16.mxu0 %vm1451_vm0, %v1450_v0  ;;  %1177 = vmatprep.mubr.msk.bf16.mxu1 %vm1451_vm0, %v1450_v0 }
  0x14   :  { %1253 = vmatprep.subr.bf16.mxu1 %v1450_v0 }
  0x15   :  { %1254 = vmatpush3.bf16.msra.mxu1 %v1394_v16 }
  0x16   :  { %1255 = vmatprep.subr.bf16.mxu1 %v1450_v0 }
  0x19   :  { %1256 = vmatpush3.bf16.msra.mxu1 %v1395_v18 }
  0x1a   :  { %1150 = vmatmul.mubr.msk.bf16.gmra.mrb[8].mxu0 %vm150_vm1, %v1367_v8  ;;  %1178 = vmatmul.mubr.msk.bf16.gmra.mrb[8].mxu1 %vm150_vm1, %v1384_v11 }
  0x1b   :  { %1153 = vmatprep.mubr.msk.bf16.mxu0 %vm1451_vm0, %v1450_v0  ;;  %1181 = vmatprep.mubr.msk.bf16.mxu1 %vm1451_vm0, %v1450_v0 }
  0x1c   :  { %1257 = vmatprep.subr.bf16.mxu1 %v1450_v0 }
  0x1d   :  { %1258 = vmatpush3.bf16.msra.mxu1 %v1396_v20 }
  0x1e   :  { %1259 = vmatprep.subr.bf16.mxu1 %v1450_v0 }
  0x21   :  { %1260 = vmatpush3.bf16.msra.mxu1 %v1397_v22 }
  0x22   :  { %1154 = vmatmul.mubr.msk.bf16.gmra.mrb[12].mxu0 %vm150_vm1, %v1368_v10  ;;  %1182 = vmatmul.mubr.msk.bf16.gmra.mrb[12].mxu1 %vm150_vm1, %v1386_v15 }
  0x23   :  { %1157 = vmatprep.mubr.msk.bf16.mxu0 %vm1451_vm0, %v1450_v0  ;;  %1185 = vmatprep.mubr.msk.bf16.mxu1 %vm1451_vm0, %v1450_v0 }
  0x24   :  { %1261 = vmatprep.subr.bf16.mxu1 %v1450_v0 }
  0x25   :  { %1262 = vmatpush3.bf16.msra.mxu1 %v1398_v24 }
  0x26   :  { %1263 = vmatprep.subr.bf16.mxu1 %v1450_v0 }
  0x29   :  { %1264 = vmatpush3.bf16.msra.mxu1 %v1399_v37 }
  0x2a   :  { %1158 = vmatmul.mubr.msk.bf16.gmra.mrb[16].mxu0 %vm150_vm1, %v1370_v13  ;;  %1186 = vmatmul.mubr.msk.bf16.gmra.mrb[16].mxu1 %vm150_vm1, %v1388_v19 }
  0x2b   :  { %1161 = vmatprep.mubr.msk.bf16.mxu0 %vm1451_vm0, %v1450_v0  ;;  %1189 = vmatprep.mubr.msk.bf16.mxu1 %vm1451_vm0, %v1450_v0 }
  0x32   :  { %1162 = vmatmul.mubr.msk.bf16.gmra.mrb[20].mxu0 %vm150_vm1, %v1371_v17  ;;  %1190 = vmatmul.mubr.msk.bf16.gmra.mrb[20].mxu1 %vm150_vm1, %v1390_v23 }
  0x33   :  { %1165 = vmatprep.mubr.msk.bf16.mxu0 %vm1451_vm0, %v1450_v0  ;;  %1265 = vmatprep.mubr.msk.bf16.mxu1 %vm1451_vm0, %v1450_v0 }
  0x3a   :  { %1166 = vmatmul.mubr.msk.bf16.gmra.mrb[24].mxu0 %vm150_vm1, %v1372_v21 }
  0x3b   :  { %1197 = vmatprep.mubr.msk.bf16.mxu0 %vm1451_vm0, %v1450_v0 }
  0x42   :  { %1198 = vmatmul.mubr.msk.bf16.vlgmr.msra.gmra.mrb[0].mxu0 %vm150_vm1, %v1373_v25 }
  0x43   :  { %1201 = vmatprep.mubr.msk.bf16.mxu0 %vm1451_vm0, %v1450_v0 }
  0x4a   :  { %1202 = vmatmul.mubr.msk.bf16.gmra.mrb[4].mxu0 %vm150_vm1, %v1374_v26 }
  0x4b   :  { %1205 = vmatprep.mubr.msk.bf16.mxu0 %vm1451_vm0, %v1450_v0 }
  0x52   :  { %1206 = vmatmul.mubr.msk.bf16.gmra.mrb[8].mxu0 %vm150_vm1, %v1375_v27 }
  0x53   :  { %1209 = vmatprep.mubr.msk.bf16.mxu0 %vm1451_vm0, %v1450_v0 }
  0x5a   :  { %1210 = vmatmul.mubr.msk.bf16.gmra.mrb[12].mxu0 %vm150_vm1, %v1376_v28 }
  0x5b   :  { %1213 = vmatprep.mubr.msk.bf16.mxu0 %vm1451_vm0, %v1450_v0 }
  0x62   :  { %1214 = vmatmul.mubr.msk.bf16.gmra.mrb[16].mxu0 %vm150_vm1, %v1377_v29 }
  0x63   :  { %1217 = vmatprep.mubr.msk.bf16.mxu0 %vm1451_vm0, %v1450_v0 }
  0x6a   :  { %1218 = vmatmul.mubr.msk.bf16.gmra.mrb[20].mxu0 %vm150_vm1, %v1378_v30 }
  0x6b   :  { %1221 = vmatprep.mubr.msk.bf16.mxu0 %vm1451_vm0, %v1450_v0 }
  0x72   :  { %1222 = vmatmul.mubr.msk.bf16.gmra.mrb[24].mxu0 %vm150_vm1, %v1379_v31 }
  0x73   :  { %1225 = vmatprep.mubr.msk.bf16.mxu0 %vm1451_vm0, %v1450_v0 }
  0x7a   :  { %1226 = vmatmul.mubr.msk.bf16.gmra.mrb[28].mxu0 %vm150_vm1, %v1381_v32 }
  0x7b   :  { %1229 = vmatprep.mubr.msk.bf16.mxu0 %vm1451_vm0, %v1450_v0 }
  0x82   :  { %1230 = vmatmul.mubr.msk.bf16.gmra.mrb[32].mxu0 %vm150_vm1, %v1383_v33 }
  0x83   :  { %1233 = vmatprep.mubr.msk.bf16.mxu0 %vm1451_vm0, %v1450_v0 }
  0x8a   :  { %1234 = vmatmul.mubr.msk.bf16.gmra.mrb[36].mxu0 %vm150_vm1, %v1385_v34 }
  0x8b   :  { %1237 = vmatprep.mubr.msk.bf16.mxu0 %vm1451_vm0, %v1450_v0 }
  0x92   :  { %1238 = vmatmul.mubr.msk.bf16.gmra.mrb[40].mxu0 %vm150_vm1, %v1387_v35 }
  0x93   :  { %1241 = vmatprep.mubr.msk.bf16.mxu0 %vm1451_vm0, %v1450_v0 }
  0x9a   :  { %1242 = vmatmul.mubr.msk.bf16.gmra.mrb[44].mxu0 %vm150_vm1, %v1389_v36 }
  0x9b   :  { %1245 = vmatprep.mubr.msk.bf16.mxu0 %vm1451_vm0, %v1450_v0 }
  0xa2   :  { %1246 = vmatmul.mubr.msk.bf16.gmra.mrb[48].mxu0 %vm150_vm1, %v1391_v38 }
  0xdd   :  { %v1680_v39 = vpop.f32.mrb[0].mxu1 }
  0xde   :  { %v1171_v40 = vpop.f32.mrb[1].mxu1 }
  0xdf   :  { %v1682_v41 = vpop.f32.mrb[2].mxu1 }
  0xe0   :  { %v1172_v42 = vpop.f32.mrb[3].mxu1 }
  0xe5   :  { %v1684_v43 = vpop.f32.mrb[4].mxu1 }
  0xe6   :  { %v1175_v44 = vpop.f32.mrb[5].mxu1 }
  0xe7   :  { %v1686_v45 = vpop.f32.mrb[6].mxu1 }
  0xe8   :  { %v1176_v46 = vpop.f32.mrb[7].mxu1 }
  0xed   :  { %v1688_v47 = vpop.f32.mrb[8].mxu1 }
  0xee   :  { %v1179_v48 = vpop.f32.mrb[9].mxu1 }
  0xef   :  { %v1690_v49 = vpop.f32.mrb[10].mxu1 }
  0xf0   :  { %v1180_v50 = vpop.f32.mrb[11].mxu1 }
  0xf5   :  { %v1692_v51 = vpop.f32.mrb[12].mxu1 }
  0xf6   :  { %v1183_v52 = vpop.f32.mrb[13].mxu1 }
  0xf7   :  { %v1694_v53 = vpop.f32.mrb[14].mxu1 }
  0xf8   :  { %v1184_v54 = vpop.f32.mrb[15].mxu1 }
  0xfd   :  { %v1696_v55 = vpop.f32.mrb[16].mxu1 }
  0xfe   :  { %v1187_v56 = vpop.f32.mrb[17].mxu1 }
  0xff   :  { %v1698_v57 = vpop.f32.mrb[18].mxu1 }
 0x100   :  { %v1188_v58 = vpop.f32.mrb[19].mxu1 }
 0x105   :  { %v1700_v59 = vpop.f32.mrb[20].mxu1 }
 0x106   :  { %v1191_v60 = vpop.f32.mrb[21].mxu1 }
 0x107   :  { %v323_v61 = vpop.f32.mrb[22].mxu1 }
 0x108   :  { %v1192_v62 = vpop.f32.mrb[23].mxu1 }
 0x115   :  { %v474_v63 = vpop.f32.mrb[0].mxu0 }
 0x116   :  { %v1199_v1 = vpop.f32.mrb[1].mxu0  ;;  %v576_v3 = vmax.f32 %v474_v63, 0.0 }
 0x117   :  { %v477_v2 = vpop.f32.mrb[2].mxu0 }
 0x118   :  { %v577_v4 = vmax.f32 %v477_v2, 0.0  ;;  %v1200_v5 = vpop.f32.mrb[3].mxu0 }
 0x11a   :  { %v601_v6 = vpack.c.bf16 %v577_v4, %v576_v3 }
 0x11c   :  { %1266 = vmatmul.mubr.bf16.vlgmr.msra.gmra.mrb[24].mxu1 %v601_v6 }
 0x11d   :  { %v482_v7 = vpop.f32.mrb[4].mxu0  ;;  %1269 = vmatprep.mubr.msk.bf16.mxu1 %vm1451_vm0, %v1450_v0 }
 0x11e   :  { %v1203_v8 = vpop.f32.mrb[5].mxu0  ;;  %v578_v10 = vmax.f32 %v482_v7, 0.0 }
 0x11f   :  { %v485_v9 = vpop.f32.mrb[6].mxu0 }
 0x120   :  { %v579_v11 = vmax.f32 %v485_v9, 0.0  ;;  %v1204_v12 = vpop.f32.mrb[7].mxu0 }
 0x122   :  { %v602_v13 = vpack.c.bf16 %v579_v11, %v578_v10 }
 0x124   :  { %1270 = vmatmul.mubr.bf16.gmra.mrb[28].mxu1 %v602_v13 }
 0x125   :  { %v490_v14 = vpop.f32.mrb[8].mxu0  ;;  %1273 = vmatprep.mubr.msk.bf16.mxu1 %vm1451_vm0, %v1450_v0 }
 0x126   :  { %v1207_v15 = vpop.f32.mrb[9].mxu0  ;;  %v580_v17 = vmax.f32 %v490_v14, 0.0 }
 0x127   :  { %v493_v16 = vpop.f32.mrb[10].mxu0 }
 0x128   :  { %v581_v18 = vmax.f32 %v493_v16, 0.0  ;;  %v1208_v19 = vpop.f32.mrb[11].mxu0 }
 0x12a   :  { %v603_v20 = vpack.c.bf16 %v581_v18, %v580_v17 }
 0x12c   :  { %1274 = vmatmul.mubr.bf16.gmra.mrb[32].mxu1 %v603_v20 }
 0x12d   :  { %v498_v21 = vpop.f32.mrb[12].mxu0  ;;  %1277 = vmatprep.mubr.msk.bf16.mxu1 %vm1451_vm0, %v1450_v0 }
 0x12e   :  { %v1211_v22 = vpop.f32.mrb[13].mxu0  ;;  %v582_v24 = vmax.f32 %v498_v21, 0.0 }
 0x12f   :  { %v501_v23 = vpop.f32.mrb[14].mxu0 }
 0x130   :  { %v583_v25 = vmax.f32 %v501_v23, 0.0  ;;  %v1212_v26 = vpop.f32.mrb[15].mxu0 }
 0x132   :  { %v604_v27 = vpack.c.bf16 %v583_v25, %v582_v24 }
 0x134   :  { %1278 = vmatmul.mubr.bf16.gmra.mrb[36].mxu1 %v604_v27 }
 0x135   :  { %v506_v28 = vpop.f32.mrb[16].mxu0  ;;  %1281 = vmatprep.mubr.msk.bf16.mxu1 %vm1451_vm0, %v1450_v0 }
 0x136   :  { %v1215_v29 = vpop.f32.mrb[17].mxu0  ;;  %v584_v31 = vmax.f32 %v506_v28, 0.0 }
 0x137   :  { %v509_v30 = vpop.f32.mrb[18].mxu0 }
 0x138   :  { %v585_v32 = vmax.f32 %v509_v30, 0.0  ;;  %v1216_v33 = vpop.f32.mrb[19].mxu0 }
 0x13a   :  { %v605_v34 = vpack.c.bf16 %v585_v32, %v584_v31 }
 0x13c   :  { %1282 = vmatmul.mubr.bf16.gmra.mrb[40].mxu1 %v605_v34 }
 0x13d   :  { %v514_v35 = vpop.f32.mrb[20].mxu0  ;;  %1285 = vmatprep.mubr.msk.bf16.mxu1 %vm1451_vm0, %v1450_v0 }
 0x13e   :  { %v1219_v36 = vpop.f32.mrb[21].mxu0  ;;  %v586_v38 = vmax.f32 %v514_v35, 0.0 }
 0x13f   :  { %v517_v37 = vpop.f32.mrb[22].mxu0 }
 0x140   :  { %v587_v40 = vmax.f32 %v517_v37, 0.0  ;;  %v1220_v42 = vpop.f32.mrb[23].mxu0 }
 0x142   :  { %v606_v44 = vpack.c.bf16 %v587_v40, %v586_v38 }
 0x144   :  { %1286 = vmatmul.mubr.bf16.gmra.mrb[44].mxu1 %v606_v44 }
 0x145   :  { %v522_v46 = vpop.f32.mrb[24].mxu0  ;;  %1289 = vmatprep.mubr.msk.bf16.mxu1 %vm1451_vm0, %v1450_v0 }
 0x146   :  { %v1223_v48 = vpop.f32.mrb[25].mxu0  ;;  %v588_v52 = vmax.f32 %v522_v46, 0.0 }
 0x147   :  { %v525_v50 = vpop.f32.mrb[26].mxu0 }
 0x148   :  { %v589_v54 = vmax.f32 %v525_v50, 0.0  ;;  %v1224_v56 = vpop.f32.mrb[27].mxu0 }
 0x14a   :  { %v607_v58 = vpack.c.bf16 %v589_v54, %v588_v52 }
 0x14c   :  { %1290 = vmatmul.mubr.bf16.gmra.mrb[48].mxu1 %v607_v58 }
 0x14d   :  { %v530_v60 = vpop.f32.mrb[28].mxu0  ;;  %1293 = vmatprep.mubr.msk.bf16.mxu1 %vm1451_vm0, %v1450_v0 }
 0x14e   :  { %v531_v61 = vadd.f32 %v530_v60, %v1680_v39  ;;  %v1227_v62 = vpop.f32.mrb[29].mxu0 }
 0x14f   :  { %v533_v63 = vpop.f32.mrb[30].mxu0 }
 0x150   :  { %v534_v1 = vadd.f32 %v533_v63, %v1682_v41  ;;  %v1228_v2 = vpop.f32.mrb[31].mxu0  ;;  %v590_v3 = vmax.f32 %v531_v61, 0.0 }
 0x152   :  { %v591_v4 = vmax.f32 %v534_v1, 0.0 }
 0x154   :  { %v608_v5 = vpack.c.bf16 %v591_v4, %v590_v3 }
 0x155   :  { %v538_v6 = vpop.f32.mrb[32].mxu0 }
 0x156   :  { %v539_v7 = vadd.f32 %v538_v6, %v1684_v43  ;;  %v1231_v8 = vpop.f32.mrb[33].mxu0  ;;  %1294 = vmatmul.mubr.bf16.gmra.mrb[52].mxu1 %v608_v5 }
 0x157   :  { %v541_v9 = vpop.f32.mrb[34].mxu0  ;;  %1297 = vmatprep.mubr.msk.bf16.mxu1 %vm1451_vm0, %v1450_v0 }
 0x158   :  { %v542_v10 = vadd.f32 %v541_v9, %v1686_v45  ;;  %v1232_v39 = vpop.f32.mrb[35].mxu0  ;;  %v592_v11 = vmax.f32 %v539_v7, 0.0 }
 0x15a   :  { %v593_v12 = vmax.f32 %v542_v10, 0.0 }
 0x15c   :  { %v609_v13 = vpack.c.bf16 %v593_v12, %v592_v11 }
 0x15d   :  { %v546_v41 = vpop.f32.mrb[36].mxu0 }
 0x15e   :  { %v547_v14 = vadd.f32 %v546_v41, %v1688_v47  ;;  %v1235_v15 = vpop.f32.mrb[37].mxu0  ;;  %1298 = vmatmul.mubr.bf16.gmra.mrb[56].mxu1 %v609_v13 }
 0x15f   :  { %v549_v16 = vpop.f32.mrb[38].mxu0  ;;  %1301 = vmatprep.mubr.msk.bf16.mxu1 %vm1451_vm0, %v1450_v0 }
 0x160   :  { %v550_v43 = vadd.f32 %v549_v16, %v1690_v49  ;;  %v1236_v17 = vpop.f32.mrb[39].mxu0  ;;  %v594_v18 = vmax.f32 %v547_v14, 0.0 }
 0x162   :  { %v595_v19 = vmax.f32 %v550_v43, 0.0 }
 0x164   :  { %v610_v20 = vpack.c.bf16 %v595_v19, %v594_v18 }
 0x165   :  { %v554_v45 = vpop.f32.mrb[40].mxu0 }
 0x166   :  { %v555_v21 = vadd.f32 %v554_v45, %v1692_v51  ;;  %v1239_v22 = vpop.f32.mrb[41].mxu0  ;;  %1302 = vmatmul.mubr.bf16.gmra.mrb[60].mxu1 %v610_v20 }
 0x167   :  { %v557_v23 = vpop.f32.mrb[42].mxu0  ;;  %1305 = vmatprep.mubr.msk.bf16.mxu1 %vm1451_vm0, %v1450_v0 }
 0x168   :  { %v558_v47 = vadd.f32 %v557_v23, %v1694_v53  ;;  %v1240_v24 = vpop.f32.mrb[43].mxu0  ;;  %v596_v25 = vmax.f32 %v555_v21, 0.0 }
 0x16a   :  { %v597_v26 = vmax.f32 %v558_v47, 0.0 }
 0x16c   :  { %v611_v27 = vpack.c.bf16 %v597_v26, %v596_v25 }
 0x16d   :  { %v562_v49 = vpop.f32.mrb[44].mxu0 }
 0x16e   :  { %v563_v28 = vadd.f32 %v562_v49, %v1696_v55  ;;  %v1243_v29 = vpop.f32.mrb[45].mxu0  ;;  %1306 = vmatmul.mubr.bf16.gmra.mrb[64].mxu1 %v611_v27 }
 0x16f   :  { %v565_v30 = vpop.f32.mrb[46].mxu0  ;;  %1309 = vmatprep.mubr.msk.bf16.mxu1 %vm1451_vm0, %v1450_v0 }
 0x170   :  { %v566_v51 = vadd.f32 %v565_v30, %v1698_v57  ;;  %v1244_v31 = vpop.f32.mrb[47].mxu0  ;;  %v598_v32 = vmax.f32 %v563_v28, 0.0 }
 0x172   :  { %v599_v33 = vmax.f32 %v566_v51, 0.0 }
 0x174   :  { %v612_v34 = vpack.c.bf16 %v599_v33, %v598_v32 }
 0x175   :  { %v570_v53 = vpop.f32.mrb[48].mxu0 }
 0x176   :  { %v571_v35 = vadd.f32 %v570_v53, %v1700_v59  ;;  %v1247_v36 = vpop.f32.mrb[49].mxu0  ;;  %1310 = vmatmul.mubr.bf16.gmra.mrb[68].mxu1 %v612_v34 }
 0x177   :  { %v573_v37 = vpop.f32.mrb[50].mxu0  ;;  %1313 = vmatprep.mubr.msk.bf16.mxu1 %vm1451_vm0, %v1450_v0 }
 0x178   :  { %v600_v55 = vmax.f32 %v571_v35, 0.0  ;;  %v1248_v38 = vpop.f32.mrb[51].mxu0 }
 0x17a   :  { %v613_v40 = vpack.c.bf16 %v600_v55, %v600_v55 }
 0x17e   :  { %1314 = vmatmul.mubr.bf16.gmra.mrb[72].mxu1 %v613_v40 }
 0x1ef   :  { %v1737_v42 = vpop.f32.mrb[24].mxu1 }
 0x1f0   :  { %v1267_v57 = vpop.f32.mrb[25].mxu1  ;;  %v814_v44 = vmul.f32 %v1737_v42, %v1737_v42 }
 0x1f1   :  { %v1741_v46 = vpop.f32.mrb[26].mxu1 }
 0x1f2   :  { %839 = vadd.xlane.f32.xlu0 %v814_v44  ;;  %v1268_v59 = vpop.f32.mrb[27].mxu1  ;;  %v815_v48 = vmul.f32 %v1741_v46, %v1741_v46 }
 0x1f6   :  { %841 = vadd.xlane.f32.xlu0 %v815_v48 }
 0x1f7   :  { %v1745_v50 = vpop.f32.mrb[28].mxu1 }
 0x1f8   :  { %v1271_v0 = vpop.f32.mrb[29].mxu1  ;;  %v816_v52 = vmul.f32 %v1745_v50, %v1745_v50 }
 0x1f9   :  { %v1749_v54 = vpop.f32.mrb[30].mxu1 }
 0x1fa   :  { %843 = vadd.xlane.f32.xlu1 %v816_v52  ;;  %v1272_v56 = vpop.f32.mrb[31].mxu1  ;;  %v817_v58 = vmul.f32 %v1749_v54, %v1749_v54 }
 0x1fe   :  { %845 = vadd.xlane.f32.xlu1 %v817_v58 }
 0x1ff   :  { %v1753_v60 = vpop.f32.mrb[32].mxu1 }
 0x200   :  { %v1275_v61 = vpop.f32.mrb[33].mxu1  ;;  %v818_v62 = vmul.f32 %v1753_v60, %v1753_v60 }
 0x201   :  { %v1757_v63 = vpop.f32.mrb[34].mxu1 }
 0x202   :  { %847 = vadd.xlane.f32.xlu0 %v818_v62  ;;  %v1276_v1 = vpop.f32.mrb[35].mxu1  ;;  %v819_v2 = vmul.f32 %v1757_v63, %v1757_v63 }
 0x204   :  { %849 = vadd.xlane.f32.xlu1 %v819_v2 }
 0x207   :  { %v1761_v3 = vpop.f32.mrb[36].mxu1 }
 0x208   :  { %v1279_v4 = vpop.f32.mrb[37].mxu1  ;;  %v820_v5 = vmul.f32 %v1761_v3, %v1761_v3 }
 0x209   :  { %v1765_v6 = vpop.f32.mrb[38].mxu1 }
 0x20a   :  { %851 = vadd.xlane.f32.xlu0 %v820_v5  ;;  %v1280_v7 = vpop.f32.mrb[39].mxu1  ;;  %v821_v8 = vmul.f32 %v1765_v6, %v1765_v6 }
 0x20c   :  { %853 = vadd.xlane.f32.xlu1 %v821_v8 }
 0x20f   :  { %v1769_v9 = vpop.f32.mrb[40].mxu1 }
 0x210   :  { %v1283_v10 = vpop.f32.mrb[41].mxu1  ;;  %v822_v39 = vmul.f32 %v1769_v9, %v1769_v9 }
 0x211   :  { %v1773_v11 = vpop.f32.mrb[42].mxu1 }
 0x212   :  { %855 = vadd.xlane.f32.xlu0 %v822_v39  ;;  %v1284_v12 = vpop.f32.mrb[43].mxu1  ;;  %v823_v13 = vmul.f32 %v1773_v11, %v1773_v11 }
 0x214   :  { %857 = vadd.xlane.f32.xlu1 %v823_v13 }
 0x217   :  { %v1777_v41 = vpop.f32.mrb[44].mxu1 }
 0x218   :  { %v1287_v14 = vpop.f32.mrb[45].mxu1  ;;  %v824_v15 = vmul.f32 %v1777_v41, %v1777_v41 }
 0x219   :  { %v1781_v16 = vpop.f32.mrb[46].mxu1 }
 0x21a   :  { %859 = vadd.xlane.f32.xlu0 %v824_v15  ;;  %v1288_v43 = vpop.f32.mrb[47].mxu1  ;;  %v825_v17 = vmul.f32 %v1781_v16, %v1781_v16 }
 0x21c   :  { %861 = vadd.xlane.f32.xlu1 %v825_v17 }
 0x21f   :  { %v1785_v18 = vpop.f32.mrb[48].mxu1 }
 0x220   :  { %v1291_v19 = vpop.f32.mrb[49].mxu1  ;;  %v826_v20 = vmul.f32 %v1785_v18, %v1785_v18 }
 0x221   :  { %v1789_v45 = vpop.f32.mrb[50].mxu1 }
 0x222   :  { %863 = vadd.xlane.f32.xlu0 %v826_v20  ;;  %v1292_v21 = vpop.f32.mrb[51].mxu1  ;;  %v827_v22 = vmul.f32 %v1789_v45, %v1789_v45 }
 0x224   :  { %865 = vadd.xlane.f32.xlu1 %v827_v22 }
 0x229   :  { %v1793_v23 = vpop.f32.mrb[52].mxu1 }
 0x22a   :  { %v1295_v47 = vpop.f32.mrb[53].mxu1  ;;  %v828_v24 = vmul.f32 %v1793_v23, %v1793_v23 }
 0x22b   :  { %v1797_v25 = vpop.f32.mrb[54].mxu1 }
 0x22c   :  { %867 = vadd.xlane.f32.xlu0 %v828_v24  ;;  %v1296_v26 = vpop.f32.mrb[55].mxu1  ;;  %v829_v27 = vmul.f32 %v1797_v25, %v1797_v25 }
 0x22e   :  { %869 = vadd.xlane.f32.xlu1 %v829_v27 }
 0x231   :  { %v1801_v49 = vpop.f32.mrb[56].mxu1 }
 0x232   :  { %v1299_v28 = vpop.f32.mrb[57].mxu1  ;;  %v830_v29 = vmul.f32 %v1801_v49, %v1801_v49 }
 0x233   :  { %v1805_v30 = vpop.f32.mrb[58].mxu1 }
 0x234   :  { %871 = vadd.xlane.f32.xlu0 %v830_v29  ;;  %v1300_v51 = vpop.f32.mrb[59].mxu1  ;;  %v831_v31 = vmul.f32 %v1805_v30, %v1805_v30 }
 0x236   :  { %873 = vadd.xlane.f32.xlu1 %v831_v31 }
 0x239   :  { %v1809_v32 = vpop.f32.mrb[60].mxu1 }
 0x23a   :  { %v1303_v33 = vpop.f32.mrb[61].mxu1  ;;  %v832_v34 = vmul.f32 %v1809_v32, %v1809_v32 }
 0x23b   :  { %v1813_v53 = vpop.f32.mrb[62].mxu1 }
 0x23c   :  { %875 = vadd.xlane.f32.xlu0 %v832_v34  ;;  %v1304_v35 = vpop.f32.mrb[63].mxu1  ;;  %v833_v36 = vmul.f32 %v1813_v53, %v1813_v53 }
 0x23e   :  { %877 = vadd.xlane.f32.xlu1 %v833_v36 }
 0x241   :  { %v1817_v37 = vpop.f32.mrb[64].mxu1 }
 0x242   :  { %v1307_v55 = vpop.f32.mrb[65].mxu1  ;;  %v834_v38 = vmul.f32 %v1817_v37, %v1817_v37 }
 0x243   :  { %v1821_v40 = vpop.f32.mrb[66].mxu1 }
 0x244   :  { %879 = vadd.xlane.f32.xlu0 %v834_v38  ;;  %v1308_v57 = vpop.f32.mrb[67].mxu1  ;;  %v835_v44 = vmul.f32 %v1821_v40, %v1821_v40 }
 0x246   :  { %881 = vadd.xlane.f32.xlu1 %v835_v44 }
 0x249   :  { %v1825_v59 = vpop.f32.mrb[68].mxu1 }
 0x24a   :  { %v1311_v48 = vpop.f32.mrb[69].mxu1  ;;  %v836_v0 = vmul.f32 %v1825_v59, %v1825_v59 }
 0x24b   :  { %v1829_v52 = vpop.f32.mrb[70].mxu1 }
 0x24c   :  { %883 = vadd.xlane.f32.xlu0 %v836_v0  ;;  %v1312_v56 = vpop.f32.mrb[71].mxu1  ;;  %v837_v58 = vmul.f32 %v1829_v52, %v1829_v52 }
 0x24e   :  { %885 = vadd.xlane.f32.xlu1 %v837_v58 }
 0x251   :  { %v1833_v61 = vpop.f32.mrb[72].mxu1 }
 0x252   :  { %v1315_v62 = vpop.f32.mrb[73].mxu1  ;;  %v838_v1 = vmul.f32 %v1833_v61, %v1833_v61 }
 0x253   :  { %v811_v2 = vpop.f32.mrb[74].mxu1 }
 0x254   :  { %887 = vadd.xlane.f32.xlu0 %v838_v1  ;;  %v1316_v4 = vpop.f32.mrb[75].mxu1 }
 0x27f   :  { %v840_v5 = vpop.xlane.xlu0 %839 }
 0x280   :  { %v889_v7 = vmax.f32 %v840_v5, 1e-24 }
 0x282   :  { %1400 = vrsqrt.f32 %v889_v7 }
 0x283   :  { %v842_v8 = vpop.xlane.xlu0 %841 }
 0x284   :  { %v890_v10 = vmax.f32 %v842_v8, 1e-24 }
 0x286   :  { %1402 = vrsqrt.f32 %v890_v10 }
 0x287   :  { %v844_v39 = vpop.xlane.xlu1 %843 }
 0x288   :  { %v891_v12 = vmax.f32 %v844_v39, 1e-24 }
 0x28a   :  { %1404 = vrsqrt.f32 %v891_v12 }
 0x28b   :  { %v846_v13 = vpop.xlane.xlu1 %845 }
 0x28c   :  { %v1401_v14 = vpop.eup %1400  ;;  %v892_v15 = vmax.f32 %v846_v13, 1e-24 }
 0x28d   :  { %v939_v43 = vmul.f32 %v1401_v14, %v1737_v42 }
 0x28e   :  { %1406 = vrsqrt.f32 %v892_v15 }
 0x28f   :  { %964 = vst [vmem:[%s1940_s3] sm:$0xff] %v939_v43  ;;  %v848_v17 = vpop.xlane.xlu0 %847 }
 0x290   :  { %v1403_v19 = vpop.eup %1402  ;;  %v893_v20 = vmax.f32 %v848_v17, 1e-24 }
 0x291   :  { %v940_v21 = vmul.f32 %v1403_v19, %v1741_v46  ;;  %v850_v22 = vpop.xlane.xlu1 %849 }
 0x292   :  { %1408 = vrsqrt.f32 %v893_v20  ;;  %v894_v47 = vmax.f32 %v850_v22, 1e-24 }
 0x293   :  { %965 = vst [vmem:[%s1940_s3 + $0x8] sm:$0xff] %v940_v21 }
 0x294   :  { %v1405_v24 = vpop.eup %1404  ;;  %1410 = vrsqrt.f32 %v894_v47 }
 0x295   :  { %v941_v42 = vmul.f32 %v1405_v24, %v1745_v50 }
 0x297   :  { %966 = vst [vmem:[%s1940_s3 + $0x10] sm:$0xff] %v941_v42  ;;  %v852_v26 = vpop.xlane.xlu0 %851 }
 0x298   :  { %v1407_v27 = vpop.eup %1406  ;;  %v895_v28 = vmax.f32 %v852_v26, 1e-24 }
 0x299   :  { %v942_v46 = vmul.f32 %v1407_v27, %v1749_v54  ;;  %v854_v29 = vpop.xlane.xlu1 %853 }
 0x29a   :  { %1412 = vrsqrt.f32 %v895_v28  ;;  %v896_v51 = vmax.f32 %v854_v29, 1e-24 }
 0x29b   :  { %967 = vst [vmem:[%s1940_s3 + $0x18] sm:$0xff] %v942_v46 }
 0x29c   :  { %v1409_v31 = vpop.eup %1408  ;;  %1414 = vrsqrt.f32 %v896_v51 }
 0x29d   :  { %v943_v50 = vmul.f32 %v1409_v31, %v1753_v60 }
 0x29e   :  { %v1411_v33 = vpop.eup %1410 }
 0x29f   :  { %968 = vst [vmem:[%s1940_s3 + $0x20] sm:$0xff] %v943_v50  ;;  %v944_v34 = vmul.f32 %v1411_v33, %v1757_v63  ;;  %v856_v35 = vpop.xlane.xlu0 %855 }
 0x2a0   :  { %v897_v54 = vmax.f32 %v856_v35, 1e-24 }
 0x2a1   :  { %969 = vst [vmem:[%s1940_s3 + $0x28] sm:$0xff] %v944_v34  ;;  %v858_v36 = vpop.xlane.xlu1 %857 }
 0x2a2   :  { %1416 = vrsqrt.f32 %v897_v54  ;;  %v898_v55 = vmax.f32 %v858_v36, 1e-24 }
 0x2a4   :  { %v1413_v38 = vpop.eup %1412  ;;  %1418 = vrsqrt.f32 %v898_v55 }
 0x2a5   :  { %v945_v60 = vmul.f32 %v1413_v38, %v1761_v3 }
 0x2a6   :  { %v1415_v57 = vpop.eup %1414 }
 0x2a7   :  { %970 = vst [vmem:[%s1940_s3 + $0x30] sm:$0xff] %v945_v60  ;;  %v946_v63 = vmul.f32 %v1415_v57, %v1765_v6  ;;  %v860_v44 = vpop.xlane.xlu0 %859 }
 0x2a8   :  { %v899_v48 = vmax.f32 %v860_v44, 1e-24 }
 0x2a9   :  { %971 = vst [vmem:[%s1940_s3 + $0x38] sm:$0xff] %v946_v63  ;;  %v862_v0 = vpop.xlane.xlu1 %861 }
 0x2aa   :  { %1420 = vrsqrt.f32 %v899_v48  ;;  %v900_v56 = vmax.f32 %v862_v0, 1e-24 }
 0x2ac   :  { %v1417_v58 = vpop.eup %1416  ;;  %1422 = vrsqrt.f32 %v900_v56 }
 0x2ad   :  { %v947_v3 = vmul.f32 %v1417_v58, %v1769_v9 }
 0x2ae   :  { %v1419_v62 = vpop.eup %1418 }
 0x2af   :  { %972 = vst [vmem:[%s1940_s3 + $0x40] sm:$0xff] %v947_v3  ;;  %v948_v6 = vmul.f32 %v1419_v62, %v1773_v11  ;;  %v864_v1 = vpop.xlane.xlu0 %863 }
 0x2b0   :  { %v901_v2 = vmax.f32 %v864_v1, 1e-24 }
 0x2b1   :  { %973 = vst [vmem:[%s1940_s3 + $0x48] sm:$0xff] %v948_v6  ;;  %v866_v4 = vpop.xlane.xlu1 %865 }
 0x2b2   :  { %1424 = vrsqrt.f32 %v901_v2  ;;  %v902_v5 = vmax.f32 %v866_v4, 1e-24 }
 0x2b4   :  { %v1421_v7 = vpop.eup %1420  ;;  %1426 = vrsqrt.f32 %v902_v5 }
 0x2b5   :  { %v949_v9 = vmul.f32 %v1421_v7, %v1777_v41 }
 0x2b6   :  { %v1423_v8 = vpop.eup %1422 }
 0x2b7   :  { %974 = vst [vmem:[%s1940_s3 + $0x50] sm:$0xff] %v949_v9  ;;  %v950_v11 = vmul.f32 %v1423_v8, %v1781_v16 }
 0x2b9   :  { %975 = vst [vmem:[%s1940_s3 + $0x58] sm:$0xff] %v950_v11  ;;  %v868_v10 = vpop.xlane.xlu0 %867 }
 0x2ba   :  { %v903_v39 = vmax.f32 %v868_v10, 1e-24 }
 0x2bb   :  { %v870_v12 = vpop.xlane.xlu1 %869 }
 0x2bc   :  { %v1425_v13 = vpop.eup %1424  ;;  %1428 = vrsqrt.f32 %v903_v39  ;;  %v904_v14 = vmax.f32 %v870_v12, 1e-24 }
 0x2bd   :  { %v951_v15 = vmul.f32 %v1425_v13, %v1785_v18 }
 0x2be   :  { %v1427_v41 = vpop.eup %1426  ;;  %1430 = vrsqrt.f32 %v904_v14 }
 0x2bf   :  { %976 = vst [vmem:[%s1940_s3 + $0x60] sm:$0xff] %v951_v15  ;;  %v952_v16 = vmul.f32 %v1427_v41, %v1789_v45 }
 0x2c1   :  { %977 = vst [vmem:[%s1940_s3 + $0x68] sm:$0xff] %v952_v16  ;;  %v872_v43 = vpop.xlane.xlu0 %871 }
 0x2c2   :  { %v905_v17 = vmax.f32 %v872_v43, 1e-24 }
 0x2c3   :  { %v874_v19 = vpop.xlane.xlu1 %873 }
 0x2c4   :  { %1432 = vrsqrt.f32 %v905_v17  ;;  %v906_v20 = vmax.f32 %v874_v19, 1e-24 }
 0x2c6   :  { %v1429_v21 = vpop.eup %1428  ;;  %1434 = vrsqrt.f32 %v906_v20 }
 0x2c7   :  { %v953_v18 = vmul.f32 %v1429_v21, %v1793_v23 }
 0x2c8   :  { %v1431_v22 = vpop.eup %1430 }
 0x2c9   :  { %978 = vst [vmem:[%s1940_s3 + $0x70] sm:$0xff] %v953_v18  ;;  %v954_v45 = vmul.f32 %v1431_v22, %v1797_v25  ;;  %v876_v47 = vpop.xlane.xlu0 %875 }
 0x2ca   :  { %v907_v24 = vmax.f32 %v876_v47, 1e-24 }
 0x2cb   :  { %979 = vst [vmem:[%s1940_s3 + $0x78] sm:$0xff] %v954_v45  ;;  %v878_v42 = vpop.xlane.xlu1 %877 }
 0x2cc   :  { %1436 = vrsqrt.f32 %v907_v24  ;;  %v908_v26 = vmax.f32 %v878_v42, 1e-24 }
 0x2ce   :  { %v1433_v27 = vpop.eup %1432  ;;  %1438 = vrsqrt.f32 %v908_v26 }
 0x2cf   :  { %v955_v23 = vmul.f32 %v1433_v27, %v1801_v49 }
 0x2d0   :  { %v1435_v28 = vpop.eup %1434 }
 0x2d1   :  { %980 = vst [vmem:[%s1940_s3 + $0x80] sm:$0xff] %v955_v23  ;;  %v956_v25 = vmul.f32 %v1435_v28, %v1805_v30  ;;  %v880_v46 = vpop.xlane.xlu0 %879 }
 0x2d2   :  { %v909_v29 = vmax.f32 %v880_v46, 1e-24 }
 0x2d3   :  { %981 = vst [vmem:[%s1940_s3 + $0x88] sm:$0xff] %v956_v25  ;;  %v882_v51 = vpop.xlane.xlu1 %881 }
 0x2d4   :  { %1440 = vrsqrt.f32 %v909_v29  ;;  %v910_v31 = vmax.f32 %v882_v51, 1e-24 }
 0x2d6   :  { %v1437_v50 = vpop.eup %1436  ;;  %1442 = vrsqrt.f32 %v910_v31 }
 0x2d7   :  { %v957_v49 = vmul.f32 %v1437_v50, %v1809_v32 }
 0x2d8   :  { %v1439_v33 = vpop.eup %1438 }
 0x2d9   :  { %982 = vst [vmem:[%s1940_s3 + $0x90] sm:$0xff] %v957_v49  ;;  %v958_v30 = vmul.f32 %v1439_v33, %v1813_v53  ;;  %v884_v34 = vpop.xlane.xlu0 %883 }
 0x2da   :  { %v911_v35 = vmax.f32 %v884_v34, 1e-24 }
 0x2db   :  { %983 = vst [vmem:[%s1940_s3 + $0x98] sm:$0xff] %v958_v30  ;;  %v886_v54 = vpop.xlane.xlu1 %885 }
 0x2dc   :  { %1444 = vrsqrt.f32 %v911_v35  ;;  %v912_v36 = vmax.f32 %v886_v54, 1e-24 }
 0x2de   :  { %v1441_v55 = vpop.eup %1440  ;;  %1446 = vrsqrt.f32 %v912_v36 }
 0x2df   :  { %v959_v32 = vmul.f32 %v1441_v55, %v1817_v37 }
 0x2e0   :  { %v1443_v38 = vpop.eup %1442 }
 0x2e1   :  { %984 = vst [vmem:[%s1940_s3 + $0xa0] sm:$0xff] %v959_v32  ;;  %v960_v53 = vmul.f32 %v1443_v38, %v1821_v40  ;;  %v888_v60 = vpop.xlane.xlu0 %887 }
 0x2e2   :  { %v913_v57 = vmax.f32 %v888_v60, 1e-24 }
 0x2e3   :  { %985 = vst [vmem:[%s1940_s3 + $0xa8] sm:$0xff] %v960_v53 }
 0x2e4   :  { %1448 = vrsqrt.f32 %v913_v57 }
 0x2e6   :  { %v1445_v63 = vpop.eup %1444 }
 0x2e7   :  { %v961_v44 = vmul.f32 %v1445_v63, %v1825_v59 }
 0x2e8   :  { %v1447_v48 = vpop.eup %1446 }
 0x2e9   :  { %986 = vst [vmem:[%s1940_s3 + $0xb0] sm:$0xff] %v961_v44  ;;  %v962_v37 = vmul.f32 %v1447_v48, %v1829_v52 }
 0x2eb   :  { %987 = vst [vmem:[%s1940_s3 + $0xb8] sm:$0xff] %v962_v37 }
 0x2ee   :  { %v1449_v40 = vpop.eup %1448 }
 0x2ef   :  { %v963_v0 = vmul.f32 %v1449_v40, %v1833_v61 }
 0x2f1   :  { %988 = vst [vmem:[%s1940_s3 + $0xc0] sm:$0xff] %v963_v0 }

</bundles_post_ra>
